<compile_context>
chip_gen: v6e
topology: v6e:2x2x1
jax: 0.10.0
libtpu: 0.0.40
codegen_flags: <defaults>
</compile_context>

<pallas_src>
import jax
import jax.numpy as jnp
from jax import lax
from jax.experimental import pallas as pl
from jax.experimental.pallas import tpu as pltpu

LANE = 128     # TPU lane width
SUBLANE = 8    # f32 sublane count; also the row count of the (8, Bp) output


def _round_up(x, m):
    return (x + m - 1) // m * m


def _cdiv(a, b):
    return -(-a // b)


def _pad_to(a, shape):
    return jnp.pad(a, [(0, s - d) for d, s in zip(a.shape, shape)])


def critic_kernel(s_ref, a_ref, w1s_ref, w1a_ref, b1_ref,
                  w2_ref, b2_ref, w3t_ref, b3_ref, o_ref):
    # fc1: concat(state, action) @ W1  ==  state @ W1[:S] + action @ W1[S:]
    h1 = jnp.dot(s_ref[...], w1s_ref[...], preferred_element_type=jnp.float32)
    h1 = h1 + jnp.dot(a_ref[...], w1a_ref[...],
                      preferred_element_type=jnp.float32)
    h1 = jnp.maximum(h1 + b1_ref[...], 0.0).astype(w2_ref.dtype)

    # fc2 + relu
    h2 = jnp.dot(h1, w2_ref[...], preferred_element_type=jnp.float32)
    h2 = jnp.maximum(h2 + b2_ref[...], 0.0).astype(w3t_ref.dtype)

    # fc3, feature-major: qT[j, b] = sum_k w3t[j, k] * h2[b, k]
    # w3t row 0 is the real fc3 column; rows 1..7 are zero padding.
    qT = lax.dot_general(w3t_ref[...], h2,
                         dimension_numbers=(((1,), (1,)), ((), ())),
                         preferred_element_type=jnp.float32)
    o_ref[...] = (qT + b3_ref[...]).astype(o_ref.dtype)


def pad_critic_params(p, state_size, compute_dtype=jnp.bfloat16):
    """Split fc1 and zero-pad all feature dims to LANE multiples.

    Zero padding is numerically exact: padded hidden columns are relu(0)=0 and
    padded weight rows multiply those zeros, so row 0 of the kernel output is
    the true Q value.  Weights are cast to `compute_dtype` (bf16 by default,
    f32 accumulation in the kernel); biases stay f32.
    """
    w1, w2, w3 = p["w1"], p["w2"], p["w3"]
    in1, h1u = w1.shape
    h2u = w2.shape[1]
    h1p, h2p = _round_up(h1u, LANE), _round_up(h2u, LANE)
    cdt = compute_dtype
    return {
        # fc1 weight split so state/action never need a wrapper-side concat.
        "w1s": _pad_to(w1[:state_size].astype(cdt), (state_size, h1p)),
        "w1a": _pad_to(w1[state_size:].astype(cdt), (in1 - state_size, h1p)),
        "b1": _pad_to(p["b1"].astype(jnp.float32), (1, h1p)),
        "w2": _pad_to(w2.astype(cdt), (h1p, h2p)),
        "b2": _pad_to(p["b2"].astype(jnp.float32), (1, h2p)),
        # fc3 stored feature-major: (8, h2p), row 0 = w3^T, rows 1..7 zero.
        "w3t": _pad_to(w3.T.astype(cdt), (SUBLANE, h2p)),
        "b3": p["b3"].astype(jnp.float32).reshape(1, 1),
    }


def _choose_batch_tiling(B, cap=2048, min_split=512):
    """Pick (TB, Bp): rows per grid step and padded batch.

    - TB is a multiple of 128 so the (8, TB) output block is lane-dense.
    - cdiv-balanced so padding never approaches 2x the useful batch.
    - at least 2 grid steps once B >= min_split so the "parallel" axis can
      shard across v7x's two TensorCores (no-op on single-TC v5e/v6e).
    """
    n_steps = max(1, _cdiv(B, cap))
    if n_steps < 2 and B >= min_split:
        n_steps = 2
    TB = _round_up(_cdiv(B, n_steps), LANE)
    return TB, TB * n_steps


def critic_forward(state, action, pp):
    """state: (B, state_size), action: (B, action_size). Returns (B, 1) f32."""
    B, S = state.shape
    A = action.shape[1]
    h1p = pp["w1s"].shape[1]
    h2p = pp["w2"].shape[1]
    cdt = pp["w1s"].dtype

    TB, Bp = _choose_batch_tiling(B)
    s = state.astype(cdt)
    a = action.astype(cdt)
    if Bp != B:
        s = jnp.pad(s, ((0, Bp - B), (0, 0)))
        a = jnp.pad(a, ((0, Bp - B), (0, 0)))

    grid = (Bp // TB,)

    cost = pl.CostEstimate(
        flops=2 * Bp * ((S + A) * h1p + h1p * h2p + h2p * SUBLANE),
        transcendentals=0,
        bytes_accessed=int(
            (s.size + a.size) * jnp.dtype(cdt).itemsize
            + sum(int(v.size) * v.dtype.itemsize for v in pp.values())
            + SUBLANE * Bp * 4),
    )

    const = lambda i: (0, 0)  # weights/biases: VMEM-resident across the grid

    out = pl.pallas_call(
        critic_kernel,
        out_shape=jax.ShapeDtypeStruct((SUBLANE, Bp), jnp.float32),
        grid=grid,
        in_specs=[
            pl.BlockSpec((TB, S), lambda i: (i, 0)),   # state tile
            pl.BlockSpec((TB, A), lambda i: (i, 0)),   # action tile
            pl.BlockSpec(pp["w1s"].shape, const),
            pl.BlockSpec(pp["w1a"].shape, const),
            pl.BlockSpec(pp["b1"].shape, const),
            pl.BlockSpec(pp["w2"].shape, const),
            pl.BlockSpec(pp["b2"].shape, const),
            pl.BlockSpec(pp["w3t"].shape, const),
            pl.BlockSpec(pp["b3"].shape, const),
        ],
        out_specs=pl.BlockSpec((SUBLANE, TB), lambda i: (0, i)),
        compiler_params=pltpu.CompilerParams(
            dimension_semantics=("parallel",)),
        cost_estimate=cost,
    )(s, a, pp["w1s"], pp["w1a"], pp["b1"], pp["w2"], pp["b2"],
      pp["w3t"], pp["b3"])

    # Feature-major output: row 0 holds the real Q values.
    return out[0, :B, None]


def init_critic_params(key, state_size, action_size, fc1_units, fc2_units):
    """Deterministic init mirroring the PyTorch CriticNetwork.

    PyTorch's hidden_init uses layer.weight.size()[0] == out_features as
    fan_in (weights are (out, in)), so lim = 1/sqrt(out_features) for fc1/fc2;
    fc3 weights in (-3e-3, 3e-3). Biases keep the nn.Linear default
    U(-1/sqrt(in_features), 1/sqrt(in_features)). Weights are stored
    (in_features, out_features) for x @ W.
    """
    ks = jax.random.split(key, 6)
    in1 = state_size + action_size

    def u(k, shape, lim):
        return jax.random.uniform(k, shape, jnp.float32, -lim, lim)

    lim1 = 1.0 / jnp.sqrt(float(fc1_units))
    lim2 = 1.0 / jnp.sqrt(float(fc2_units))
    return {
        "w1": u(ks[0], (in1, fc1_units), lim1),
        "b1": u(ks[1], (1, fc1_units), 1.0 / jnp.sqrt(float(in1))),
        "w2": u(ks[2], (fc1_units, fc2_units), lim2),
        "b2": u(ks[3], (1, fc2_units), 1.0 / jnp.sqrt(float(fc1_units))),
        "w3": u(ks[4], (fc2_units, 1), 0.003),
        "b3": u(ks[5], (1, 1), 1.0 / jnp.sqrt(float(fc2_units))),
    }


def critic_forward_ref(state, action, p):
    x = jnp.concatenate([state, action], axis=1)
    h1 = jnp.maximum(x @ p["w1"] + p["b1"], 0.0)
    h2 = jnp.maximum(h1 @ p["w2"] + p["b2"], 0.0)
    return h2 @ p["w3"] + p["b3"]


if __name__ == "__main__":
    B = 8
    STATE_SIZE = 16
    ACTION_SIZE = 8
    FC1_UNITS = 64
    FC2_UNITS = 32

    key = jax.random.PRNGKey(0)
    k_params, k_state, k_action = jax.random.split(key, 3)
    params = init_critic_params(k_params, STATE_SIZE, ACTION_SIZE,
                                FC1_UNITS, FC2_UNITS)
    # bf16 weights / f32 biases + f32 accumulation (pass jnp.float32 for exact
    # f32 semantics).
    padded = pad_critic_params(params, STATE_SIZE)

    state = jax.random.normal(k_state, (B, STATE_SIZE), jnp.float32)
    action = jnp.tanh(jax.random.normal(k_action, (B, ACTION_SIZE), jnp.float32))

    out = jax.block_until_ready(critic_forward(state, action, padded))
    ref = jax.block_until_ready(critic_forward_ref(state, action, params))

    assert out.shape == (B, 1), out.shape
    err = float(jnp.max(jnp.abs(out - ref)))
    # bf16 inputs/weights with f32 accumulation vs. the pure-f32 reference:
    # observed error is O(1e-4) at these magnitudes; 5e-3 leaves wide margin.
    assert err < 5e-3, err
    print("KERNEL_OK")
</pallas_src>

<mosaic_0001>
module attributes {stable_mosaic.version = 11 : i64} {
  func.func @critic_kernel(%arg0: i32, %arg1: memref<128x16xbf16, #tpu.memory_space<vmem>>, %arg2: memref<128x8xbf16, #tpu.memory_space<vmem>>, %arg3: memref<16x128xbf16, #tpu.memory_space<vmem>>, %arg4: memref<8x128xbf16, #tpu.memory_space<vmem>>, %arg5: memref<1x128xf32, #tpu.memory_space<vmem>>, %arg6: memref<128x128xbf16, #tpu.memory_space<vmem>>, %arg7: memref<1x128xf32, #tpu.memory_space<vmem>>, %arg8: memref<8x128xbf16, #tpu.memory_space<vmem>>, %arg9: memref<1x1xf32, #tpu.memory_space<vmem>>, %arg10: memref<8x128xf32, #tpu.memory_space<vmem>>) attributes {dimension_semantics = [#tpu.dimension_semantics<parallel>], iteration_bounds = array<i64: 1>, scalar_prefetch = 0 : i64, scratch_operands = 0 : i64, tpu.core_type = #tpu.core_type<tc>, window_params = [{transform_indices = @transform_0, window_bounds = array<i64: 128, 16>}, {transform_indices = @transform_1, window_bounds = array<i64: 128, 8>}, {pipeline_mode = #tpu.pipeline_mode<synchronous>, transform_indices = @transform_2, window_bounds = array<i64: 16, 128>}, {pipeline_mode = #tpu.pipeline_mode<synchronous>, transform_indices = @transform_3, window_bounds = array<i64: 8, 128>}, {pipeline_mode = #tpu.pipeline_mode<synchronous>, transform_indices = @transform_4, window_bounds = array<i64: 1, 128>}, {pipeline_mode = #tpu.pipeline_mode<synchronous>, transform_indices = @transform_5, window_bounds = array<i64: 128, 128>}, {pipeline_mode = #tpu.pipeline_mode<synchronous>, transform_indices = @transform_6, window_bounds = array<i64: 1, 128>}, {pipeline_mode = #tpu.pipeline_mode<synchronous>, transform_indices = @transform_7, window_bounds = array<i64: 8, 128>}, {pipeline_mode = #tpu.pipeline_mode<synchronous>, transform_indices = @transform_8, window_bounds = array<i64: 1, 1>}, {transform_indices = @transform_9, window_bounds = array<i64: 8, 128>}]} {
    %c0 = arith.constant 0 : index
    %c0_0 = arith.constant 0 : index
    %0 = vector.load %arg1[%c0, %c0_0] : memref<128x16xbf16, #tpu.memory_space<vmem>>, vector<128x16xbf16>
    %c0_1 = arith.constant 0 : index
    %c0_2 = arith.constant 0 : index
    %1 = vector.load %arg3[%c0_1, %c0_2] : memref<16x128xbf16, #tpu.memory_space<vmem>>, vector<16x128xbf16>
    %cst = arith.constant dense<0.000000e+00> : vector<128x128xf32>
    %2 = tpu.matmul %0, %1, %cst {dimension_numbers = #tpu.dot_dimension_numbers<[1], [0], [0], [1], [0, 0, 1, 1], [], []>} : vector<128x16xbf16>, vector<16x128xbf16>, vector<128x128xf32> -> vector<128x128xf32>
    %c0_3 = arith.constant 0 : index
    %c0_4 = arith.constant 0 : index
    %3 = vector.load %arg2[%c0_3, %c0_4] : memref<128x8xbf16, #tpu.memory_space<vmem>>, vector<128x8xbf16>
    %c0_5 = arith.constant 0 : index
    %c0_6 = arith.constant 0 : index
    %4 = vector.load %arg4[%c0_5, %c0_6] : memref<8x128xbf16, #tpu.memory_space<vmem>>, vector<8x128xbf16>
    %cst_7 = arith.constant dense<0.000000e+00> : vector<128x128xf32>
    %5 = tpu.matmul %3, %4, %cst_7 {dimension_numbers = #tpu.dot_dimension_numbers<[1], [0], [0], [1], [0, 0, 1, 1], [], []>} : vector<128x8xbf16>, vector<8x128xbf16>, vector<128x128xf32> -> vector<128x128xf32>
    %6 = arith.addf %2, %5 : vector<128x128xf32>
    %c0_8 = arith.constant 0 : index
    %c0_9 = arith.constant 0 : index
    %7 = vector.load %arg5[%c0_8, %c0_9] : memref<1x128xf32, #tpu.memory_space<vmem>>, vector<1x128xf32>
    %8 = vector.broadcast %7 : vector<1x128xf32> to vector<128x128xf32>
    %9 = arith.addf %6, %8 : vector<128x128xf32>
    %cst_10 = arith.constant 0.000000e+00 : f32
    %10 = vector.broadcast %cst_10 : f32 to vector<128x128xf32>
    %11 = arith.maximumf %9, %10 : vector<128x128xf32>
    %12 = arith.truncf %11 : vector<128x128xf32> to vector<128x128xbf16>
    %c0_11 = arith.constant 0 : index
    %c0_12 = arith.constant 0 : index
    %13 = vector.load %arg6[%c0_11, %c0_12] : memref<128x128xbf16, #tpu.memory_space<vmem>>, vector<128x128xbf16>
    %cst_13 = arith.constant dense<0.000000e+00> : vector<128x128xf32>
    %14 = tpu.matmul %12, %13, %cst_13 {dimension_numbers = #tpu.dot_dimension_numbers<[1], [0], [0], [1], [0, 0, 1, 1], [], []>} : vector<128x128xbf16>, vector<128x128xbf16>, vector<128x128xf32> -> vector<128x128xf32>
    %c0_14 = arith.constant 0 : index
    %c0_15 = arith.constant 0 : index
    %15 = vector.load %arg7[%c0_14, %c0_15] : memref<1x128xf32, #tpu.memory_space<vmem>>, vector<1x128xf32>
    %16 = vector.broadcast %15 : vector<1x128xf32> to vector<128x128xf32>
    %17 = arith.addf %14, %16 : vector<128x128xf32>
    %cst_16 = arith.constant 0.000000e+00 : f32
    %18 = vector.broadcast %cst_16 : f32 to vector<128x128xf32>
    %19 = arith.maximumf %17, %18 : vector<128x128xf32>
    %20 = arith.truncf %19 : vector<128x128xf32> to vector<128x128xbf16>
    %c0_17 = arith.constant 0 : index
    %c0_18 = arith.constant 0 : index
    %21 = vector.load %arg8[%c0_17, %c0_18] : memref<8x128xbf16, #tpu.memory_space<vmem>>, vector<8x128xbf16>
    %cst_19 = arith.constant dense<0.000000e+00> : vector<8x128xf32>
    %22 = tpu.matmul %21, %20, %cst_19 {dimension_numbers = #tpu.dot_dimension_numbers<[1], [1], [0], [0], [0, 0, 1, 0], [], []>} : vector<8x128xbf16>, vector<128x128xbf16>, vector<8x128xf32> -> vector<8x128xf32>
    %c0_20 = arith.constant 0 : index
    %c0_21 = arith.constant 0 : index
    %23 = vector.load %arg9[%c0_20, %c0_21] : memref<1x1xf32, #tpu.memory_space<vmem>>, vector<1x1xf32>
    %24 = vector.broadcast %23 : vector<1x1xf32> to vector<8x128xf32>
    %25 = arith.addf %22, %24 : vector<8x128xf32>
    %c0_22 = arith.constant 0 : index
    %c0_23 = arith.constant 0 : index
    %26 = vector.load %arg10[%c0_22, %c0_23] : memref<8x128xf32, #tpu.memory_space<vmem>>, vector<8x128xf32>
    tpu.vector_store %arg10[%c0_22, %c0_23], %25 {strides = array<i32>} : memref<8x128xf32, #tpu.memory_space<vmem>>, vector<8x128xf32>,
    return
  }
  func.func @transform_0(%arg0: i32) -> (i32, i32) {
    %c0_i32 = arith.constant 0 : i32
    %c0_i32_0 = arith.constant 0 : i32
    return %arg0, %c0_i32 : i32, i32
  }
  func.func @transform_1(%arg0: i32) -> (i32, i32) {
    %c0_i32 = arith.constant 0 : i32
    %c0_i32_0 = arith.constant 0 : i32
    return %arg0, %c0_i32 : i32, i32
  }
  func.func @transform_2(%arg0: i32) -> (i32, i32) {
    %c0_i32 = arith.constant 0 : i32
    %c0_i32_0 = arith.constant 0 : i32
    %c0_i32_1 = arith.constant 0 : i32
    return %c0_i32, %c0_i32_0 : i32, i32
  }
  func.func @transform_3(%arg0: i32) -> (i32, i32) {
    %c0_i32 = arith.constant 0 : i32
    %c0_i32_0 = arith.constant 0 : i32
    %c0_i32_1 = arith.constant 0 : i32
    return %c0_i32, %c0_i32_0 : i32, i32
  }
  func.func @transform_4(%arg0: i32) -> (i32, i32) {
    %c0_i32 = arith.constant 0 : i32
    %c0_i32_0 = arith.constant 0 : i32
    %c0_i32_1 = arith.constant 0 : i32
    return %c0_i32, %c0_i32_0 : i32, i32
  }
  func.func @transform_5(%arg0: i32) -> (i32, i32) {
    %c0_i32 = arith.constant 0 : i32
    %c0_i32_0 = arith.constant 0 : i32
    %c0_i32_1 = arith.constant 0 : i32
    return %c0_i32, %c0_i32_0 : i32, i32
  }
  func.func @transform_6(%arg0: i32) -> (i32, i32) {
    %c0_i32 = arith.constant 0 : i32
    %c0_i32_0 = arith.constant 0 : i32
    %c0_i32_1 = arith.constant 0 : i32
    return %c0_i32, %c0_i32_0 : i32, i32
  }
  func.func @transform_7(%arg0: i32) -> (i32, i32) {
    %c0_i32 = arith.constant 0 : i32
    %c0_i32_0 = arith.constant 0 : i32
    %c0_i32_1 = arith.constant 0 : i32
    return %c0_i32, %c0_i32_0 : i32, i32
  }
  func.func @transform_8(%arg0: i32) -> (i32, i32) {
    %c0_i32 = arith.constant 0 : i32
    %c0_i32_0 = arith.constant 0 : i32
    %c0_i32_1 = arith.constant 0 : i32
    return %c0_i32, %c0_i32_0 : i32, i32
  }
  func.func @transform_9(%arg0: i32) -> (i32, i32) {
    %c0_i32 = arith.constant 0 : i32
    %c0_i32_0 = arith.constant 0 : i32
    return %c0_i32, %arg0 : i32, i32
  }
}

</mosaic_0001>

<bundles_post_ra>
// kernel: tpu_custom_call.1
= control target key start
LH: loop header
LB: loop body
LE: loop exit
PB: predicated region body
PF: predicated region fallthrough
CT: control target
= control target key end

     0   :  { %s1128_s0 = inlined_call_operand.vmem [shape: bf16[128,16], index: 0, kind: input, shape index: {}]   ;;  %s1129_s1 = inlined_call_operand.vmem [shape: bf16[128,8], index: 1, kind: input, shape index: {}]   ;;  %s1130_s2 = inlined_call_operand.vmem [shape: bf16[16,128], index: 2, kind: input, shape index: {}]   ;;  %s1131_s3 = inlined_call_operand.vmem [shape: bf16[8,128], index: 3, kind: input, shape index: {}]   ;;  %s1132_s4 = inlined_call_operand.vmem [shape: f32[1,128], index: 4, kind: input, shape index: {}]   ;;  %s1133_s5 = inlined_call_operand.vmem [shape: bf16[128,128], index: 5, kind: input, shape index: {}]   ;;  %s1134_s6 = inlined_call_operand.vmem [shape: f32[1,128], index: 6, kind: input, shape index: {}]   ;;  %s1135_s7 = inlined_call_operand.vmem [shape: bf16[8,128], index: 7, kind: input, shape index: {}]   ;;  %s1136_s8 = inlined_call_operand.<no memory space> [shape: f32[1,1], index: 8, kind: input, shape index: {}]   ;;  %s1137_s9 = inlined_call_operand.hbm [shape: f32[8,128], index: 9, kind: output, shape index: {}]  }
   0x1   :  { %v14_v0 = vstv %s1136_s8 }
   0x2   :  { %15 = vst [vmem:[#allocation2] sm:$0x1] %v14_v0 }
   0x3   :  { %v70_v1 = vld [vmem:[%s1131_s3] sm:$0xf]  ;;  %vm136_vm0 = vcmask 1043456   ;;  %vm111_vm1 = vcmask 64512   ;;  %v893_v5 = vld [vmem:[%s1129_s1 + $0x8] sm:$0xff]   ;;  %vm283_vm2 = vcmask 130048  }
   0x4   :  { %v891_v2 = vld [vmem:[%s1130_s2] sm:$0xff]   ;;  %885 = vmatprep.subr.msk.bf16.mxu0 %vm136_vm0, %v70_v1  ;;  %v138_v3 = vsel %vm136_vm0, %v70_v1, 0  ;;  %v895_v7 = vld [vmem:[%s1128_s0 + $0x8] sm:$0xff]   ;;  %v896_v8 = vld [vmem:[%s1129_s1 + $0x10] sm:$0xff]  }
   0x5   :  { %v892_v4 = vld [vmem:[%s1129_s1] sm:$0xff]   ;;  %798 = vmatpush3.bf16.msra.mxu0 %v138_v3  ;;  %815 = vmatprep.subr.bf16.mxu1 %v891_v2  ;;  %v898_v9 = vld [vmem:[%s1128_s0 + $0x10] sm:$0xff]   ;;  %v897_v10 = vld [vmem:[%s1129_s1 + $0x18] sm:$0xff]  }
   0x6   :  { %799 = vmatprep.mubr.msk.bf16.mxu0 %vm111_vm1, %v892_v4  ;;  %816 = vmatpush3.bf16.msra.mxu1 %v891_v2  ;;  %v894_v6 = vld [vmem:[%s1128_s0] sm:$0xff]   ;;  %v899_v12 = vld [vmem:[%s1128_s0 + $0x18] sm:$0xff]   ;;  %v901_v14 = vld [vmem:[%s1129_s1 + $0x28] sm:$0xff]  }
   0x7   :  { %817 = vmatprep.mubr.msk.bf16.mxu1 %vm283_vm2, %v894_v6  ;;  %v900_v11 = vld [vmem:[%s1129_s1 + $0x20] sm:$0xff]   ;;  %v903_v15 = vld [vmem:[%s1128_s0 + $0x28] sm:$0xff]   ;;  %v904_v16 = vld [vmem:[%s1129_s1 + $0x30] sm:$0xff]  }
   0x8   :  { %800 = vmatmul.mubr.msk.bf16.vlgmr.msra.gmra.mxu0 %vm111_vm1, %v893_v5  ;;  %v902_v13 = vld [vmem:[%s1128_s0 + $0x20] sm:$0xff]   ;;  %v908_v17 = vld [vmem:[%s1133_s5 + $0x38] sm:$0xff]   ;;  %v909_v18 = vld [vmem:[%s1133_s5 + $0x30] sm:$0xff]  }
   0x9   :  { %818 = vmatmul.mubr.msk.bf16.vlgmr.msra.gmra.mxu1 %vm283_vm2, %v895_v7  ;;  %803 = vmatprep.mubr.msk.bf16.mxu0 %vm111_vm1, %v896_v8  ;;  %v906_v19 = vld [vmem:[%s1128_s0 + $0x30] sm:$0xff]   ;;  %v910_v20 = vld [vmem:[%s1133_s5 + $0x28] sm:$0xff]  }
   0xa   :  { %821 = vmatprep.mubr.msk.bf16.mxu1 %vm283_vm2, %v898_v9  ;;  %833 = vmatprep.subr.bf16.mxu0 %v908_v17 }
   0xb   :  { %834 = vmatpush3.bf16.msra.mxu0 %v908_v17 }
   0xc   :  { %835 = vmatprep.subr.bf16.mxu0 %v909_v18 }
  0x10   :  { %804 = vmatmul.mubr.msk.bf16.gmra.mxu0 %vm111_vm1, %v897_v10 }
  0x11   :  { %807 = vmatprep.mubr.msk.bf16.mxu0 %vm111_vm1, %v900_v11  ;;  %822 = vmatmul.mubr.msk.bf16.gmra.mxu1 %vm283_vm2, %v899_v12 }
  0x12   :  { %825 = vmatprep.mubr.msk.bf16.mxu1 %vm283_vm2, %v902_v13 }
  0x18   :  { %808 = vmatmul.mubr.msk.bf16.gmra.mxu0 %vm111_vm1, %v901_v14 }
  0x19   :  { %811 = vmatprep.mubr.msk.bf16.mxu0 %vm111_vm1, %v904_v16  ;;  %826 = vmatmul.mubr.msk.bf16.gmra.mxu1 %vm283_vm2, %v903_v15 }
  0x1a   :  { %829 = vmatprep.mubr.msk.bf16.mxu1 %vm283_vm2, %v906_v19 }
  0x1b   :  { %16 = vsyncpa [#allocation4], 0  ;;  %v905_v21 = vld [vmem:[%s1129_s1 + $0x38] sm:$0xff]   ;;  %836 = vmatpush3.bf16.msra.mxu0 %v909_v18  ;;  %v911_v23 = vld [vmem:[%s1133_s5 + $0x20] sm:$0xff]   ;;  %vm939_vm3 = vmmov 0   ;;  %s941_s16 = smov [#allocation3]  }
  0x1c   :  { %v907_v22 = vld [vmem:[%s1128_s0 + $0x38] sm:$0xff]   ;;  %837 = vmatprep.subr.bf16.mxu0 %v910_v20  ;;  %v913_v25 = vld [vmem:[%s1133_s5 + $0x10] sm:$0xff]   ;;  %v914_v26 = vld [vmem:[%s1133_s5 + $0x8] sm:$0xff]   ;;  %s702_s8 = sshll.u32 %s941_s16, 4  ;;  %s703_s8 = int_to_ptr.vmem [resolvable:$true] %s702_s8 }
  0x1d   :  { %v912_v24 = vld [vmem:[%s1133_s5 + $0x18] sm:$0xff]   ;;  %v915_v27 = vld [vmem:[%s1133_s5] sm:$0xff]   ;;  %s916_s17 = scalar_lea.vmem %s703_s8, 128  ;;  %p921_p1 = scmp.lt.s32.totalorder %s703_s8, %s703_s8 }
  0x1e   :  { %v1092_v37 = vld [vmem:[%s1132_s4] ss:$0 sm:$0xff]  ;;  %p917_p0 = scmp.ne.s32.totalorder %s703_s8, %s916_s17  ;;  %p922_p2 = scmp.lt.s32.totalorder %s916_s17, %s916_s17 }
  0x1f   :  { %838 = vmatpush3.bf16.msra.mxu0 %v910_v20 }
  0x20   :  { %812 = vmatmul.mubr.msk.bf16.gmra.mxu0 %vm111_vm1, %v905_v21  ;;  %839 = vmatprep.subr.bf16.mxu0 %v911_v23  ;;  %p923_p3 = por %p922_p2, %p921_p1 }
  0x21   :  { %830 = vmatmul.mubr.msk.bf16.gmra.mxu1 %vm283_vm2, %v907_v22 }
  0x22   :  { %p924_p4 = pnand %p923_p3, %p917_p0 }
  0x23   :  { %840 = vmatpush3.bf16.msra.mxu0 %v911_v23 }
  0x24   :  { %841 = vmatprep.subr.bf16.mxu0 %v912_v24 }
  0x27   :  { %842 = vmatpush3.bf16.msra.mxu0 %v912_v24 }
  0x28   :  { %843 = vmatprep.subr.bf16.mxu0 %v913_v25 }
  0x2b   :  { %844 = vmatpush3.bf16.msra.mxu0 %v913_v25 }
  0x2c   :  { %845 = vmatprep.subr.bf16.mxu0 %v914_v26 }
  0x2f   :  { %846 = vmatpush3.bf16.msra.mxu0 %v914_v26 }
  0x30   :  { %847 = vmatprep.subr.bf16.mxu0 %v915_v27 }
  0x33   :  { %848 = vmatpush3.bf16.msra.mxu0 %v915_v27 }
  0xc8   :  { %v801_v28 = vpop.f32.mrf.mxu0 }
  0xc9   :  { %v819_v30 = vpop.f32.mrf.mxu1 }
  0xca   :  { %v174_v29 = vpop.f32.mrf.mxu0  ;;  %v351_v34 = vadd.f32 %v819_v30, %v801_v28 }
  0xcb   :  { %v342_v32 = vpop.f32.mrf.mxu1 }
  0xcc   :  { %v802_v31 = vpop.f32.mrf.mxu0  ;;  %v343_v33 = vadd.f32 %v342_v32, %v174_v29  ;;  %v414_v44 = vadd.f32 %v1092_v37, %v351_v34 }
  0xcd   :  { %v820_v36 = vpop.f32.mrf.mxu1 }
  0xce   :  { %v177_v35 = vpop.f32.mrf.mxu0  ;;  %v354_v38 = vadd.f32 %v820_v36, %v802_v31  ;;  %v412_v41 = vadd.f32 %v1092_v37, %v343_v33  ;;  %v430_v54 = vmax.f32 %v414_v44, 0.0 }
  0xcf   :  { %v345_v40 = vpop.f32.mrf.mxu1 }
  0xd0   :  { %v805_v39 = vpop.f32.mrf.mxu0  ;;  %v415_v42 = vadd.f32 %v1092_v37, %v354_v38  ;;  %v346_v43 = vadd.f32 %v345_v40, %v177_v35  ;;  %v428_v51 = vmax.f32 %v412_v41, 0.0 }
  0xd1   :  { %v823_v46 = vpop.f32.mrf.mxu1 }
  0xd2   :  { %v190_v45 = vpop.f32.mrf.mxu0  ;;  %v413_v47 = vadd.f32 %v1092_v37, %v346_v43  ;;  %v431_v48 = vmax.f32 %v415_v42, 0.0  ;;  %v367_v55 = vadd.f32 %v823_v46, %v805_v39 }
  0xd3   :  { %v358_v50 = vpop.f32.mrf.mxu1 }
  0xd4   :  { %v806_v49 = vpop.f32.mrf.mxu0  ;;  %v429_v52 = vmax.f32 %v413_v47, 0.0  ;;  %v359_v53 = vadd.f32 %v358_v50, %v190_v45  ;;  %v445_v60 = vpack.c.bf16 %v431_v48, %v430_v54  ;;  %v418_v2 = vadd.f32 %v1092_v37, %v367_v55  ;;  %v753_v55 = vld [vmem:[#allocation2] ss:$0 sm:$0xff] }
  0xd5   :  { %v824_v57 = vpop.f32.mrf.mxu1  ;;  %v938_v54 = vmov 0.0  }
  0xd6   :  { %v193_v56 = vpop.f32.mrf.mxu0  ;;  %v370_v58 = vadd.f32 %v824_v57, %v806_v49  ;;  %v444_v59 = vpack.c.bf16 %v429_v52, %v428_v51  ;;  %v416_v63 = vadd.f32 %v1092_v37, %v359_v53  ;;  %v434_v12 = vmax.f32 %v418_v2, 0.0  ;;  %865 = vmatprep.subr.bf16.mxu1 %v938_v54  ;;  %881 = vmatprep.mubr.msk.bf16.mxu1 %vm939_vm3, %v938_v54 }
  0xd7   :  { %v361_v62 = vpop.f32.mrf.mxu1 }
  0xd8   :  { %v809_v61 = vpop.f32.mrf.mxu0  ;;  %v419_v0 = vadd.f32 %v1092_v37, %v370_v58  ;;  %v362_v1 = vadd.f32 %v361_v62, %v193_v56  ;;  %849 = vmatprep.mubr.bf16.mxu0 %v444_v59  ;;  %v432_v9 = vmax.f32 %v416_v63, 0.0  ;;  %v940_v56 = vmov 0  }
  0xd9   :  { %v827_v4 = vpop.f32.mrf.mxu1  ;;  %850 = vmatmul.mubr.bf16.vlgmr.msra.gmra.mxu0 %v445_v60  ;;  %890 = vset.pattern.permute.xlu0 %v940_v56 }
  0xda   :  { %v206_v3 = vpop.f32.mrf.mxu0  ;;  %v417_v5 = vadd.f32 %v1092_v37, %v362_v1  ;;  %v435_v6 = vmax.f32 %v419_v0, 0.0  ;;  %v383_v13 = vadd.f32 %v827_v4, %v809_v61  ;;  %652 = vperm.xlu0 %890, %v753_v55  }
  0xdb   :  { %v374_v8 = vpop.f32.mrf.mxu1 }
  0xdc   :  { %v810_v7 = vpop.f32.mrf.mxu0  ;;  %v433_v10 = vmax.f32 %v417_v5, 0.0  ;;  %v375_v11 = vadd.f32 %v374_v8, %v206_v3  ;;  %v447_v20 = vpack.c.bf16 %v435_v6, %v434_v12  ;;  %v422_v24 = vadd.f32 %v1092_v37, %v383_v13 }
  0xdd   :  { %v828_v15 = vpop.f32.mrf.mxu1 }
  0xde   :  { %v209_v14 = vpop.f32.mrf.mxu0  ;;  %v386_v16 = vadd.f32 %v828_v15, %v810_v7  ;;  %v446_v17 = vpack.c.bf16 %v433_v10, %v432_v9  ;;  %v420_v21 = vadd.f32 %v1092_v37, %v375_v11  ;;  %v438_v34 = vmax.f32 %v422_v24, 0.0 }
  0xdf   :  { %v377_v19 = vpop.f32.mrf.mxu1 }
  0xe0   :  { %v813_v18 = vpop.f32.mrf.mxu0  ;;  %v423_v22 = vadd.f32 %v1092_v37, %v386_v16  ;;  %v378_v23 = vadd.f32 %v377_v19, %v209_v14  ;;  %853 = vmatprep.mubr.bf16.mxu0 %v446_v17  ;;  %v436_v31 = vmax.f32 %v420_v21, 0.0 }
  0xe1   :  { %v831_v26 = vpop.f32.mrf.mxu1  ;;  %854 = vmatmul.mubr.bf16.gmra.mxu0 %v447_v20 }
  0xe2   :  { %v222_v25 = vpop.f32.mrf.mxu0  ;;  %v421_v27 = vadd.f32 %v1092_v37, %v378_v23  ;;  %v439_v28 = vmax.f32 %v423_v22, 0.0  ;;  %v399_v35 = vadd.f32 %v831_v26, %v813_v18 }
  0xe3   :  { %v390_v30 = vpop.f32.mrf.mxu1 }
  0xe4   :  { %v814_v29 = vpop.f32.mrf.mxu0  ;;  %v437_v32 = vmax.f32 %v421_v27, 0.0  ;;  %v391_v33 = vadd.f32 %v390_v30, %v222_v25  ;;  %v449_v42 = vpack.c.bf16 %v439_v28, %v438_v34  ;;  %v426_v46 = vadd.f32 %v1092_v37, %v399_v35 }
  0xe5   :  { %v832_v38 = vpop.f32.mrf.mxu1 }
  0xe6   :  { %v225_v36 = vpop.f32.mrf.mxu0  ;;  %v402_v39 = vadd.f32 %v832_v38, %v814_v29  ;;  %v448_v40 = vpack.c.bf16 %v437_v32, %v436_v31  ;;  %v424_v43 = vadd.f32 %v1092_v37, %v391_v33  ;;  %v442_v51 = vmax.f32 %v426_v46, 0.0 }
  0xe7   :  { %v393_v41 = vpop.f32.mrf.mxu1 }
  0xe8   :  { %v427_v44 = vadd.f32 %v1092_v37, %v402_v39  ;;  %v394_v45 = vadd.f32 %v393_v41, %v225_v36  ;;  %857 = vmatprep.mubr.bf16.mxu0 %v448_v40  ;;  %v440_v49 = vmax.f32 %v424_v43, 0.0 }
  0xe9   :  { %858 = vmatmul.mubr.bf16.gmra.mxu0 %v449_v42 }
  0xea   :  { %v425_v47 = vadd.f32 %v1092_v37, %v394_v45  ;;  %v443_v48 = vmax.f32 %v427_v44, 0.0  ;;  %v744_v37 = vld [vmem:[%s1134_s6] ss:$0 sm:$0xff] }
  0xec   :  { %v441_v50 = vmax.f32 %v425_v47, 0.0  ;;  %v451_v53 = vpack.c.bf16 %v443_v48, %v442_v51 }
  0xee   :  { %v450_v52 = vpack.c.bf16 %v441_v50, %v440_v49  ;;  %v644_v50 = vld [vmem:[%s1135_s7] sm:$0xf] }
  0xf0   :  { %861 = vmatprep.mubr.bf16.mxu0 %v450_v52 }
  0xf1   :  { %862 = vmatmul.mubr.bf16.gmra.mxu0 %v451_v53 }
 0x155   :  { %v653_v51 = vpop.permute.xlu0 %652 }
 0x199   :  { %v851_v57 = vpop.f32.mrf.mxu0 }
 0x19a   :  { %v566_v59 = vadd.f32 %v851_v57, %v744_v37 }
 0x19b   :  { %v557_v58 = vpop.f32.mrf.mxu0 }
 0x19c   :  { %v558_v61 = vadd.f32 %v744_v37, %v557_v58  ;;  %v622_v0 = vmax.f32 %v566_v59, 0.0 }
 0x19d   :  { %v852_v60 = vpop.f32.mrf.mxu0 }
 0x19e   :  { %v569_v62 = vadd.f32 %v852_v60, %v744_v37  ;;  %v620_v4 = vmax.f32 %v558_v61, 0.0 }
 0x19f   :  { %v560_v63 = vpop.f32.mrf.mxu0 }
 0x1a0   :  { %v623_v1 = vmax.f32 %v569_v62, 0.0  ;;  %v561_v2 = vadd.f32 %v744_v37, %v560_v63 }
 0x1a1   :  { %v855_v3 = vpop.f32.mrf.mxu0 }
 0x1a2   :  { %v637_v5 = vpack.c.bf16 %v623_v1, %v622_v0  ;;  %v621_v6 = vmax.f32 %v561_v2, 0.0  ;;  %v582_v41 = vadd.f32 %v855_v3, %v744_v37 }
 0x1a3   :  { %v573_v7 = vpop.f32.mrf.mxu0 }
 0x1a4   :  { %v636_v8 = vpack.c.bf16 %v621_v6, %v620_v4  ;;  %v626_v43 = vmax.f32 %v582_v41, 0.0  ;;  %v574_v46 = vadd.f32 %v744_v37, %v573_v7 }
 0x1a5   :  { %v856_v9 = vpop.f32.mrf.mxu0 }
 0x1a6   :  { %v585_v39 = vadd.f32 %v856_v9, %v744_v37  ;;  %v624_v48 = vmax.f32 %v574_v46, 0.0 }
 0x1a7   :  { %v576_v10 = vpop.f32.mrf.mxu0 }
 0x1a8   :  { %v627_v42 = vmax.f32 %v585_v39, 0.0  ;;  %v577_v45 = vadd.f32 %v744_v37, %v576_v10 }
 0x1a9   :  { %v859_v11 = vpop.f32.mrf.mxu0 }
 0x1aa   :  { %v598_v30 = vadd.f32 %v859_v11, %v744_v37  ;;  %v639_v44 = vpack.c.bf16 %v627_v42, %v626_v43  ;;  %v625_v47 = vmax.f32 %v577_v45, 0.0 }
 0x1ab   :  { %v589_v12 = vpop.f32.mrf.mxu0 }
 0x1ac   :  { %v630_v32 = vmax.f32 %v598_v30, 0.0  ;;  %v590_v35 = vadd.f32 %v744_v37, %v589_v12  ;;  %v638_v49 = vpack.c.bf16 %v625_v47, %v624_v48 }
 0x1ad   :  { %v860_v13 = vpop.f32.mrf.mxu0 }
 0x1ae   :  { %v601_v28 = vadd.f32 %v860_v13, %v744_v37  ;;  %v628_v38 = vmax.f32 %v590_v35, 0.0 }
 0x1af   :  { %v592_v14 = vpop.f32.mrf.mxu0 }
 0x1b0   :  { %v631_v31 = vmax.f32 %v601_v28, 0.0  ;;  %v593_v34 = vadd.f32 %v744_v37, %v592_v14 }
 0x1b1   :  { %v863_v15 = vpop.f32.mrf.mxu0 }
 0x1b2   :  { %v614_v17 = vadd.f32 %v863_v15, %v744_v37  ;;  %v641_v33 = vpack.c.bf16 %v631_v31, %v630_v32  ;;  %v629_v36 = vmax.f32 %v593_v34, 0.0 }
 0x1b3   :  { %v605_v16 = vpop.f32.mrf.mxu0 }
 0x1b4   :  { %v634_v21 = vmax.f32 %v614_v17, 0.0  ;;  %v606_v25 = vadd.f32 %v744_v37, %v605_v16  ;;  %v640_v40 = vpack.c.bf16 %v629_v36, %v628_v38 }
 0x1b5   :  { %v864_v18 = vpop.f32.mrf.mxu0 }
 0x1b6   :  { %v617_v19 = vadd.f32 %v864_v18, %v744_v37  ;;  %v632_v27 = vmax.f32 %v606_v25, 0.0 }
 0x1b7   :  { %v608_v20 = vpop.f32.mrf.mxu0 }
 0x1b8   :  { %v635_v22 = vmax.f32 %v617_v19, 0.0  ;;  %v609_v24 = vadd.f32 %v744_v37, %v608_v20 }
 0x1ba   :  { %v643_v23 = vpack.c.bf16 %v635_v22, %v634_v21  ;;  %v633_v26 = vmax.f32 %v609_v24, 0.0 }
 0x1bc   :  { %866 = vmatpush3.bf16.xpose.msra.mxu1 %v643_v23  ;;  %v642_v29 = vpack.c.bf16 %v633_v26, %v632_v27 }
 0x1bd   :  { %867 = vmatprep.subr.bf16.mxu1 %v938_v54 }
 0x1c4   :  { %868 = vmatpush3.bf16.xpose.msra.mxu1 %v642_v29 }
 0x1c5   :  { %869 = vmatprep.subr.bf16.mxu1 %v938_v54 }
 0x1cc   :  { %870 = vmatpush3.bf16.xpose.msra.mxu1 %v641_v33 }
 0x1cd   :  { %871 = vmatprep.subr.bf16.mxu1 %v938_v54 }
 0x1d4   :  { %872 = vmatpush3.bf16.xpose.msra.mxu1 %v640_v40 }
 0x1d5   :  { %873 = vmatprep.subr.bf16.mxu1 %v938_v54 }
 0x1dc   :  { %874 = vmatpush3.bf16.xpose.msra.mxu1 %v639_v44 }
 0x1dd   :  { %875 = vmatprep.subr.bf16.mxu1 %v938_v54 }
 0x1e4   :  { %876 = vmatpush3.bf16.xpose.msra.mxu1 %v638_v49 }
 0x1e5   :  { %877 = vmatprep.subr.bf16.mxu1 %v938_v54 }
 0x1ec   :  { %878 = vmatpush3.bf16.xpose.msra.mxu1 %v637_v5 }
 0x1ed   :  { %879 = vmatprep.subr.bf16.mxu1 %v938_v54 }
 0x1f4   :  { %880 = vmatpush3.bf16.xpose.msra.mxu1 %v636_v8 }
 0x1fb   :  { %882 = vmatmul.mubr.bf16.vlgmr.msra.gmra.mxu1 %v644_v50 }
 0x2bb   :  { %v689_v52 = vpop.f32.mrf.mxu1 }
 0x2bc   :  { %v690_v53 = vadd.f32 %v689_v52, %v653_v51 }
 0x2bd   :  { %v883_v55 = vpop.f32.mrf.mxu1 }
 0x2be   :  { %695 = vst [vmem:[#allocation3] sm:$0xff] %v690_v53 }
 0x2bf   :  { %v692_v56 = vpop.f32.mrf.mxu1 }
 0x2c0   :  { %927 = shalt.err (!%p924_p4)
}
 0x2c1   :  { %705 = dma.vmem_to_hbm [thread:$0]  %s703_s8, 128, %s1137_s9, [#allocation4]   ;;  %v884_v54 = vpop.f32.mrf.mxu1 }
 0x2c2   :  { %936 = dma.done.wait [#allocation4], 128  }
 0x2c3   :  { %937 = vsyncadd [#allocation4], 4294967168 }
 0x2c4   :  { %709 = vsyncpa [#allocation4], 1 }

</bundles_post_ra>
